<compile_context>
chip_gen: v7x
topology: tpu7x:2x2x1
jax: 0.10.0
libtpu: 0.0.40
codegen_flags: <defaults>
</compile_context>

<pallas_src>
import functools

import jax
import jax.numpy as jnp
from jax.experimental import pallas as pl
from jax.experimental.pallas import tpu as pltpu


# ------------------------------ fused kernel ------------------------------- #

def _fused_seg_kernel(pT_ref, w1_ref, w2_ref, kt_ref, o_ref, *,
                      n_batch, hf_wf, hw):
    # backbone: 3x3 stride-2 conv as im2col matmul + ReLU.
    # w1_ref carries a passthrough row that reproduces the ones row of pT, so
    # featT already contains the bias row for the classifier fold.
    # NOTE: the bias-fold relies on ReLU(1) == 1; it breaks for activations
    # that do not fix 1 (GELU, leaky variants with scaling, ...).
    featT = jnp.maximum(
        jnp.dot(w1_ref[...], pT_ref[...], preferred_element_type=jnp.float32),
        0.0)                                                 # (c_feat_pad, M)

    # classifier: 1x1 conv (bias folded via the ones row of featT).
    logitsT = jnp.dot(w2_ref[...], featT,
                      preferred_element_type=jnp.float32)    # (n_cls, M)

    # bilinear (align_corners=False) upsample: per-batch matmul against the
    # single shared Kronecker interpolation matrix, stored straight into the
    # batch's contiguous lane window of the lane-dense output.
    for n in range(n_batch):                                 # static unroll
        up_n = jnp.dot(logitsT[:, n * hf_wf:(n + 1) * hf_wf], kt_ref[...],
                       preferred_element_type=jnp.float32)   # (n_cls, H*W)
        o_ref[:, n * hw:(n + 1) * hw] = up_n.astype(o_ref.dtype)


# ------------------------------ glue helpers ------------------------------- #

def _round_up(x, m):
    return (x + m - 1) // m * m


def im2col(x, k, stride, pad):
    """x: (N, C, H, W) -> patches (N*Ho*Wo, C*k*k), plus (Ho, Wo)."""
    N, C, H, W = x.shape
    xp = jnp.pad(x, ((0, 0), (0, 0), (pad, pad), (pad, pad)))
    Ho = (H + 2 * pad - k) // stride + 1
    Wo = (W + 2 * pad - k) // stride + 1
    cols = []
    for di in range(k):
        for dj in range(k):
            cols.append(
                xp[:, :, di:di + stride * Ho:stride, dj:dj + stride * Wo:stride]
            )
    cols = jnp.stack(cols, axis=2)                    # (N, C, k*k, Ho, Wo)
    cols = cols.transpose(0, 3, 4, 1, 2).reshape(N * Ho * Wo, C * k * k)
    return cols, Ho, Wo


def bilinear_matrix(out_size, in_size):
    """PyTorch F.interpolate(mode='bilinear', align_corners=False) weights.

    Matches PyTorch for upscaling (half-pixel centers, negative clamp, edge
    clamp); does not reproduce PyTorch's antialiased downscaling.
    """
    i = jnp.arange(out_size, dtype=jnp.float32)
    scale = in_size / out_size
    src = (i + 0.5) * scale - 0.5
    src = jnp.maximum(src, 0.0)
    i0 = jnp.floor(src).astype(jnp.int32)
    i0 = jnp.minimum(i0, in_size - 1)
    i1 = jnp.minimum(i0 + 1, in_size - 1)
    frac = src - i0.astype(jnp.float32)
    w = jnp.zeros((out_size, in_size), jnp.float32)
    rows = jnp.arange(out_size)
    w = w.at[rows, i0].add(1.0 - frac)
    w = w.at[rows, i1].add(frac)
    return w


# -------------------- one-time (per-model) weight-side prep ----------------- #

def prepare_seg_params(params, input_hw, *, k=3, stride=2, pad=1):
    """Builds padded, bias-folded kernel weight operands + the bilinear matrix.

    Call once per model; only im2col of x runs per forward call.
    """
    H, W = input_hw
    w1, b1, w2, b2 = params["w1"], params["b1"], params["w2"], params["b2"]
    c_feat, c_in = w1.shape[0], w1.shape[1]
    n_cls = w2.shape[0]
    K = c_in * k * k

    Hf = (H + 2 * pad - k) // stride + 1
    Wf = (W + 2 * pad - k) // stride + 1

    K_pad = _round_up(K + 1, 8)            # ones row + zero padding rows
    c_feat_pad = _round_up(c_feat + 1, 8)  # passthrough row + zero padding

    # backbone weights with bias folded; passthrough row keeps the ones row
    # alive for the classifier bias fold (relies on ReLU(1) == 1).
    w1_aug = jnp.zeros((c_feat_pad, K_pad), jnp.float32)
    w1_aug = w1_aug.at[:c_feat, :K].set(w1.reshape(c_feat, K))
    w1_aug = w1_aug.at[:c_feat, K].set(b1)
    w1_aug = w1_aug.at[c_feat, K].set(1.0)               # passthrough of ones

    # classifier weights with bias folded (padding columns hit ReLU(0)=0 rows)
    w2_aug = jnp.zeros((n_cls, c_feat_pad), jnp.float32)
    w2_aug = w2_aug.at[:, :c_feat].set(w2.reshape(n_cls, c_feat))
    w2_aug = w2_aug.at[:, c_feat].set(b2)

    # bilinear upsample as a single shared Kronecker matrix (per image)
    wh = bilinear_matrix(H, Hf)                           # (H, Hf)
    ww = bilinear_matrix(W, Wf)                           # (W, Wf)
    kt = jnp.kron(wh, ww).T                               # (Hf*Wf, H*W)

    return {
        "w1_aug": w1_aug, "w2_aug": w2_aug, "kt": kt,
        "K": K, "K_pad": K_pad, "feat_hw": (Hf, Wf),
        "n_cls": n_cls, "k": k, "stride": stride, "pad": pad,
    }


# ----------------------- _SimpleSegmentationModel fwd ----------------------- #

def simple_segmentation_forward(x, prep):
    """x: (N, C, H, W) float32 NCHW -> logits (N, num_classes, H, W)."""
    N, C, H, W = x.shape
    k, stride, pad = prep["k"], prep["stride"], prep["pad"]

    # per-call prep: im2col only (weight-side operands are precomputed)
    patches, Hf, Wf = im2col(x, k=k, stride=stride, pad=pad)     # (M, C*k*k)
    M = N * Hf * Wf
    K, K_pad = prep["K"], prep["K_pad"]

    # transposed, bias-augmented, sublane-padded patches (pixel axis in lanes)
    pT = jnp.zeros((K_pad, M), jnp.float32)
    pT = pT.at[:K, :].set(patches.T)
    pT = pT.at[K, :].set(1.0)

    w1_aug, w2_aug, kt = prep["w1_aug"], prep["w2_aug"], prep["kt"]
    n_cls = prep["n_cls"]
    hf_wf = Hf * Wf
    hw = H * W

    kernel = functools.partial(_fused_seg_kernel,
                               n_batch=N, hf_wf=hf_wf, hw=hw)
    out = pl.pallas_call(
        kernel,
        grid=(1,),
        in_specs=[
            pl.BlockSpec(pT.shape, lambda i: (0, 0)),
            pl.BlockSpec(w1_aug.shape, lambda i: (0, 0)),
            pl.BlockSpec(w2_aug.shape, lambda i: (0, 0)),
            pl.BlockSpec(kt.shape, lambda i: (0, 0)),
        ],
        out_specs=pl.BlockSpec((n_cls, N * hw), lambda i: (0, 0)),
        out_shape=jax.ShapeDtypeStruct((n_cls, N * hw), jnp.float32),
        compiler_params=pltpu.CompilerParams(
            dimension_semantics=("arbitrary",)),
    )(pT, w1_aug, w2_aug, kt)

    # lane-dense (n_cls, N*H*W) -> (N, n_cls, H, W): tiny permute in XLA.
    return out.reshape(n_cls, N, H, W).transpose(1, 0, 2, 3)
    # TODO(synk): aux_classifier branch of the original wrapper is unused by
    # the given forward (only the interpolated main head is returned), so it
    # is omitted.


# --------------------------- pure-JAX f32 reference ------------------------- #

def reference_forward(x, params):
    w1, b1, w2, b2 = params["w1"], params["b1"], params["w2"], params["b2"]
    feat = jax.lax.conv_general_dilated(
        x, w1, window_strides=(2, 2), padding=((1, 1), (1, 1)),
        dimension_numbers=("NCHW", "OIHW", "NCHW"))
    feat = jnp.maximum(feat + b1[None, :, None, None], 0.0)
    n_cls = w2.shape[0]
    logits = jnp.einsum("nchw,kc->nkhw", feat, w2.reshape(n_cls, -1))
    logits = logits + b2[None, :, None, None]
    H, W = x.shape[-2:]
    Hf, Wf = feat.shape[-2:]
    wh = bilinear_matrix(H, Hf)
    ww = bilinear_matrix(W, Wf)
    return jnp.einsum("hp,nkpq,wq->nkhw", wh, logits, ww)


# ---------------------------------- main ----------------------------------- #

if __name__ == "__main__":
    key = jax.random.PRNGKey(0)
    k_x, k_w1, k_b1, k_w2, k_b2 = jax.random.split(key, 5)

    N, C, H, W = 2, 4, 16, 16
    C_FEAT, N_CLS = 8, 3

    x = jax.random.normal(k_x, (N, C, H, W), dtype=jnp.float32)
    params = {
        # backbone conv: (Cout, Cin, kH, kW) like nn.Conv2d
        "w1": 0.1 * jax.random.normal(k_w1, (C_FEAT, C, 3, 3), dtype=jnp.float32),
        "b1": 0.01 * jax.random.normal(k_b1, (C_FEAT,), dtype=jnp.float32),
        # classifier 1x1 conv: (num_classes, Cfeat, 1, 1)
        "w2": 0.1 * jax.random.normal(k_w2, (N_CLS, C_FEAT, 1, 1), dtype=jnp.float32),
        "b2": 0.01 * jax.random.normal(k_b2, (N_CLS,), dtype=jnp.float32),
    }

    # one-time weight-side prep (hoisted out of the per-call forward)
    prep = jax.tree.map(jax.block_until_ready,
                        prepare_seg_params(params, (H, W)))

    out = jax.block_until_ready(simple_segmentation_forward(x, prep))
    assert out.shape == (N, N_CLS, H, W)
    assert out.dtype == jnp.float32

    # numerics check: all-f32 kernel vs f32 reference -> tight tolerance
    ref = jax.block_until_ready(reference_forward(x, params))
    max_err = float(jnp.max(jnp.abs(out - ref)))
    assert max_err < 1e-4, f"max abs error too large: {max_err}"

    print("KERNEL_OK")
</pallas_src>

<mosaic_0001>
module attributes {stable_mosaic.version = 11 : i64} {
  func.func @_fused_seg_kernel(%arg0: i32, %arg1: memref<40x128xf32, #tpu.memory_space<vmem>>, %arg2: memref<16x40xf32, #tpu.memory_space<vmem>>, %arg3: memref<3x16xf32, #tpu.memory_space<vmem>>, %arg4: memref<64x256xf32, #tpu.memory_space<vmem>>, %arg5: memref<3x512xf32, #tpu.memory_space<vmem>>) attributes {dimension_semantics = [#tpu.dimension_semantics<arbitrary>], iteration_bounds = array<i64: 1>, scalar_prefetch = 0 : i64, scratch_operands = 0 : i64, tpu.core_type = #tpu.core_type<tc>, window_params = [{pipeline_mode = #tpu.pipeline_mode<synchronous>, transform_indices = @transform_0, window_bounds = array<i64: 40, 128>}, {pipeline_mode = #tpu.pipeline_mode<synchronous>, transform_indices = @transform_1, window_bounds = array<i64: 16, 40>}, {pipeline_mode = #tpu.pipeline_mode<synchronous>, transform_indices = @transform_2, window_bounds = array<i64: 3, 16>}, {pipeline_mode = #tpu.pipeline_mode<synchronous>, transform_indices = @transform_3, window_bounds = array<i64: 64, 256>}, {pipeline_mode = #tpu.pipeline_mode<synchronous>, transform_indices = @transform_4, window_bounds = array<i64: 3, 512>}]} {
    %c0 = arith.constant 0 : index
    %c0_0 = arith.constant 0 : index
    %0 = vector.load %arg2[%c0, %c0_0] : memref<16x40xf32, #tpu.memory_space<vmem>>, vector<16x40xf32>
    %c0_1 = arith.constant 0 : index
    %c0_2 = arith.constant 0 : index
    %1 = vector.load %arg1[%c0_1, %c0_2] : memref<40x128xf32, #tpu.memory_space<vmem>>, vector<40x128xf32>
    %cst = arith.constant dense<0.000000e+00> : vector<16x128xf32>
    %2 = tpu.matmul %0, %1, %cst {dimension_numbers = #tpu.dot_dimension_numbers<[1], [0], [0], [1], [0, 0, 1, 1], [], []>} : vector<16x40xf32>, vector<40x128xf32>, vector<16x128xf32> -> vector<16x128xf32>
    %cst_3 = arith.constant 0.000000e+00 : f32
    %3 = vector.broadcast %cst_3 : f32 to vector<16x128xf32>
    %4 = arith.maximumf %2, %3 : vector<16x128xf32>
    %c0_4 = arith.constant 0 : index
    %c0_5 = arith.constant 0 : index
    %5 = vector.load %arg3[%c0_4, %c0_5] : memref<3x16xf32, #tpu.memory_space<vmem>>, vector<3x16xf32>
    %cst_6 = arith.constant dense<0.000000e+00> : vector<3x128xf32>
    %6 = tpu.matmul %5, %4, %cst_6 {dimension_numbers = #tpu.dot_dimension_numbers<[1], [0], [0], [1], [0, 0, 1, 1], [], []>} : vector<3x16xf32>, vector<16x128xf32>, vector<3x128xf32> -> vector<3x128xf32>
    %7 = vector.extract_strided_slice %6 {offsets = [0, 0], sizes = [3, 64], strides = [1, 1]} : vector<3x128xf32> to vector<3x64xf32>
    %c0_7 = arith.constant 0 : index
    %c0_8 = arith.constant 0 : index
    %8 = vector.load %arg4[%c0_7, %c0_8] : memref<64x256xf32, #tpu.memory_space<vmem>>, vector<64x256xf32>
    %cst_9 = arith.constant dense<0.000000e+00> : vector<3x256xf32>
    %9 = tpu.matmul %7, %8, %cst_9 {dimension_numbers = #tpu.dot_dimension_numbers<[1], [0], [0], [1], [0, 0, 1, 1], [], []>} : vector<3x64xf32>, vector<64x256xf32>, vector<3x256xf32> -> vector<3x256xf32>
    %c0_10 = arith.constant 0 : index
    %c0_11 = arith.constant 0 : index
    %10 = vector.load %arg5[%c0_10, %c0_11] : memref<3x512xf32, #tpu.memory_space<vmem>>, vector<3x256xf32>
    tpu.vector_store %arg5[%c0_10, %c0_11], %9 {strides = array<i32>} : memref<3x512xf32, #tpu.memory_space<vmem>>, vector<3x256xf32>,
    %11 = vector.extract_strided_slice %6 {offsets = [0, 64], sizes = [3, 64], strides = [1, 1]} : vector<3x128xf32> to vector<3x64xf32>
    %c0_12 = arith.constant 0 : index
    %c0_13 = arith.constant 0 : index
    %12 = vector.load %arg4[%c0_12, %c0_13] : memref<64x256xf32, #tpu.memory_space<vmem>>, vector<64x256xf32>
    %cst_14 = arith.constant dense<0.000000e+00> : vector<3x256xf32>
    %13 = tpu.matmul %11, %12, %cst_14 {dimension_numbers = #tpu.dot_dimension_numbers<[1], [0], [0], [1], [0, 0, 1, 1], [], []>} : vector<3x64xf32>, vector<64x256xf32>, vector<3x256xf32> -> vector<3x256xf32>
    %c0_15 = arith.constant 0 : index
    %c256 = arith.constant 256 : index
    %14 = vector.load %arg5[%c0_15, %c256] : memref<3x512xf32, #tpu.memory_space<vmem>>, vector<3x256xf32>
    tpu.vector_store %arg5[%c0_15, %c256], %13 {strides = array<i32>} : memref<3x512xf32, #tpu.memory_space<vmem>>, vector<3x256xf32>,
    return
  }
  func.func @transform_0(%arg0: i32) -> (i32, i32) {
    %c0_i32 = arith.constant 0 : i32
    %c0_i32_0 = arith.constant 0 : i32
    %c0_i32_1 = arith.constant 0 : i32
    return %c0_i32, %c0_i32_0 : i32, i32
  }
  func.func @transform_1(%arg0: i32) -> (i32, i32) {
    %c0_i32 = arith.constant 0 : i32
    %c0_i32_0 = arith.constant 0 : i32
    %c0_i32_1 = arith.constant 0 : i32
    return %c0_i32, %c0_i32_0 : i32, i32
  }
  func.func @transform_2(%arg0: i32) -> (i32, i32) {
    %c0_i32 = arith.constant 0 : i32
    %c0_i32_0 = arith.constant 0 : i32
    %c0_i32_1 = arith.constant 0 : i32
    return %c0_i32, %c0_i32_0 : i32, i32
  }
  func.func @transform_3(%arg0: i32) -> (i32, i32) {
    %c0_i32 = arith.constant 0 : i32
    %c0_i32_0 = arith.constant 0 : i32
    %c0_i32_1 = arith.constant 0 : i32
    return %c0_i32, %c0_i32_0 : i32, i32
  }
  func.func @transform_4(%arg0: i32) -> (i32, i32) {
    %c0_i32 = arith.constant 0 : i32
    %c0_i32_0 = arith.constant 0 : i32
    %c0_i32_1 = arith.constant 0 : i32
    return %c0_i32, %c0_i32_0 : i32, i32
  }
}

</mosaic_0001>

<bundles_post_ra>
// kernel: tpu_custom_call.1
= control target key start
LH: loop header
LB: loop body
LE: loop exit
PB: predicated region body
PF: predicated region fallthrough
CT: control target
= control target key end

     0   :  { %9 = vsyncpa [#allocation3], 0  ;;  %s714_s0 = inlined_call_operand.hbm [shape: f32[40,128], index: 0, kind: input, shape index: {}]   ;;  %s715_s1 = inlined_call_operand.hbm [shape: f32[16,40], index: 1, kind: input, shape index: {}]   ;;  %s716_s2 = inlined_call_operand.vmem [shape: f32[3,16], index: 2, kind: input, shape index: {}]   ;;  %s717_s3 = inlined_call_operand.hbm [shape: f32[64,256], index: 3, kind: input, shape index: {}]   ;;  %s718_s4 = inlined_call_operand.hbm [shape: f32[3,512], index: 4, kind: output, shape index: {}]  }
   0x1   :  { %10 = vsyncpa [#allocation6], 0 }
   0x2   :  { %11 = vsyncpa [#allocation4], 0  ;;  %s617_s15 = smov [#allocation5]   ;;  %s618_s17 = smov [#allocation2]  }
   0x3   :  { %s29_s16 = sshll.u32 %s617_s15, 4  ;;  %s17_s18 = sshll.u32 %s618_s17, 4  ;;  %s30_s16 = int_to_ptr.vmem [resolvable:$true] %s29_s16  ;;  %s654_s18 = int_to_ptr.vmem [resolvable:$true] %s17_s18 }
   0x4   :  { %s523_s21 = scalar_lea.hbm %s715_s1, 256 }
   0x5   :  { %p524_p0 = scmp.ne.s32.totalorder %s715_s1, %s523_s21  ;;  %p527_p1 = scmp.lt.u32.totalorder %s523_s21, %s715_s1 }
   0x7   :  { %p529_p2 = pnand %p527_p1, %p524_p0 }
   0x9   :  { %532 = shalt.err (!%p529_p2)
}
   0xa   :  { %s533_s26 = scalar_lea.vmem %s30_s16, 256  ;;  %p538_p4 = scmp.lt.s32.totalorder %s30_s16, %s30_s16 }
   0xb   :  { %p534_p3 = scmp.ne.s32.totalorder %s30_s16, %s533_s26  ;;  %p539_p5 = scmp.lt.s32.totalorder %s533_s26, %s533_s26 }
   0xd   :  { %p540_p6 = por %p539_p5, %p538_p4 }
   0xf   :  { %p541_p7 = pnand %p540_p6, %p534_p3 }
  0x11   :  { %544 = shalt.err (!%p541_p7)
}
  0x12   :  { %s619_s27 = smov 128   ;;  %s620_s28 = smov 8  }
  0x13   :  { %35 = dma.hbm_to_vmem [thread:$0]  %s715_s1, 256, %s30_s16, [#allocation6], %s619_s27, %s619_s27, %s620_s28  }
  0x14   :  { %s545_s7 = scalar_lea.hbm %s714_s0, 640 }
  0x15   :  { %p546_p8 = scmp.ne.s32.totalorder %s714_s0, %s545_s7  ;;  %p549_p9 = scmp.lt.u32.totalorder %s545_s7, %s714_s0 }
  0x17   :  { %p551_p10 = pnand %p549_p9, %p546_p8 }
  0x19   :  { %554 = shalt.err (!%p551_p10)
}
  0x1a   :  { %s555_s12 = scalar_lea.vmem %s654_s18, 640  ;;  %p560_p12 = scmp.lt.s32.totalorder %s654_s18, %s654_s18 }
  0x1b   :  { %p556_p11 = scmp.ne.s32.totalorder %s654_s18, %s555_s12  ;;  %p561_p13 = scmp.lt.s32.totalorder %s555_s12, %s555_s12 }
  0x1d   :  { %p562_p0 = por %p561_p13, %p560_p12 }
  0x1f   :  { %p563_p1 = pnand %p562_p0, %p556_p11 }
  0x21   :  { %566 = shalt.err (!%p563_p1)
}
  0x22   :  { %23 = dma.hbm_to_vmem [thread:$0]  %s714_s0, 640, %s654_s18, [#allocation3], %s619_s27, %s619_s27, %s620_s28  }
  0x23   :  { %s621_s14 = smov [#allocation7]   ;;  %s567_s19 = scalar_lea.hbm %s717_s3, 2048 }
  0x24   :  { %s43_s15 = sshll.u32 %s621_s14, 4  ;;  %p568_p2 = scmp.ne.s32.totalorder %s717_s3, %s567_s19  ;;  %s44_s15 = int_to_ptr.vmem [resolvable:$true] %s43_s15 }
  0x25   :  { %p571_p3 = scmp.lt.u32.totalorder %s567_s19, %s717_s3 }
  0x27   :  { %p573_p4 = pnand %p571_p3, %p568_p2 }
  0x29   :  { %576 = shalt.err (!%p573_p4)
}
  0x2a   :  { %s577_s24 = scalar_lea.vmem %s44_s15, 2048  ;;  %p582_p6 = scmp.lt.s32.totalorder %s44_s15, %s44_s15 }
  0x2b   :  { %p578_p5 = scmp.ne.s32.totalorder %s44_s15, %s577_s24  ;;  %p583_p7 = scmp.lt.s32.totalorder %s577_s24, %s577_s24 }
  0x2d   :  { %p584_p8 = por %p583_p7, %p582_p6 }
  0x2f   :  { %p585_p9 = pnand %p584_p8, %p578_p5 }
  0x31   :  { %588 = shalt.err (!%p585_p9)
}
  0x32   :  { %s622_s0 = smov 256   ;;  %s623_s18 = smov 16  }
  0x33   :  { %49 = dma.hbm_to_vmem [thread:$0]  %s717_s3, 2048, %s44_s15, [#allocation6], %s622_s0, %s622_s0, %s623_s18  }
  0x34   :  { %611 = dma.done.wait [#allocation3], 640  }
  0x35   :  { %612 = vsyncadd [#allocation3], 4294966656 }
  0x36   :  { %613 = dma.done.wait [#allocation6], 2304  }
  0x37   :  { %614 = vsyncadd [#allocation6], 4294964992  ;;  %vm66_vm0 = vcmask 326656   ;;  %v61_v0 = vld [vmem:[#allocation2] sm:$0xff]  ;;  %v62_v1 = vld [vmem:[#allocation2 + $0x8] sm:$0xff]  ;;  %v624_v9 = vmov 0.0|0.0  }
  0x38   :  { %v63_v2 = vld [vmem:[#allocation2 + $0x10] sm:$0xff]  ;;  %v468_v3 = vpack.c.bf16 %v62_v1, %v61_v0  ;;  %v64_v4 = vld [vmem:[#allocation2 + $0x18] sm:$0xff]  ;;  %v59_v5 = vld [vmem:[#allocation5] sm:$0xff]  ;;  %476 = vmatprep.subr.bf16.mxu1 %v624_v9  ;;  %vm625_vm1 = vmmov 0   ;;  %v626_v10 = vmov 0.0   ;;  %vm151_vm2 = vcmask 130048  }
  0x39   :  { %v472_v6 = vpack.c.bf16 %v64_v4, %v63_v2  ;;  %458 = vmatprep.mubr.msk.f32.mxu0 %vm66_vm0, %v59_v5  ;;  %v65_v7 = vld [vmem:[#allocation2 + $0x20] sm:$0xff]  ;;  %v60_v8 = vld [vmem:[#allocation5 + $0x8] sm:$0xff]  ;;  %465 = vmatprep.mubr.msk.f32.mxu1 %vm625_vm1, %v626_v10  ;;  %v225_v13 = vld [vmem:[#allocation7] sm:$0xff]  ;;  %vm241_vm3 = vcmask 523264   ;;  %s627_s28 = smov 64  }
  0x3a   :  { %469 = vmatprep.subr.bf16.mxu0 %v468_v3  ;;  %v226_v11 = vld [vmem:[#allocation7 + $0x8] sm:$0xff]  ;;  %v228_v12 = vld [vmem:[#allocation7 + $0x18] sm:$0xff]  ;;  %v227_v15 = vld [vmem:[#allocation7 + $0x10] sm:$0xff] }
  0x3b   :  { %471 = vmatpush3.bf16.msra.mxu0 %v468_v3  ;;  %v479_v14 = vpack.c.bf16 %v228_v12, %v226_v11  ;;  %v230_v16 = vld [vmem:[#allocation7 + $0x28] sm:$0xff]  ;;  %v232_v17 = vld [vmem:[#allocation7 + $0x38] sm:$0xff]  ;;  %v481_v18 = vpack.c.bf16 %v227_v15, %v225_v13  ;;  %v229_v20 = vld [vmem:[#allocation7 + $0x20] sm:$0xff] }
  0x3c   :  { %473 = vmatprep.subr.bf16.mxu0 %v472_v6  ;;  %v483_v19 = vpack.c.bf16 %v232_v17, %v230_v16  ;;  %v231_v21 = vld [vmem:[#allocation7 + $0x30] sm:$0xff]  ;;  %v234_v22 = vld [vmem:[#allocation7 + $0x48] sm:$0xff]  ;;  %v236_v23 = vld [vmem:[#allocation7 + $0x58] sm:$0xff] }
  0x3d   :  { %v485_v24 = vpack.c.bf16 %v231_v21, %v229_v20  ;;  %v487_v25 = vpack.c.bf16 %v236_v23, %v234_v22  ;;  %v233_v26 = vld [vmem:[#allocation7 + $0x40] sm:$0xff]  ;;  %v235_v27 = vld [vmem:[#allocation7 + $0x50] sm:$0xff]  ;;  %v238_v28 = vld [vmem:[#allocation7 + $0x68] sm:$0xff] }
  0x3e   :  { %v240_v29 = vld [vmem:[#allocation7 + $0x78] sm:$0xff]  ;;  %v489_v30 = vpack.c.bf16 %v235_v27, %v233_v26  ;;  %v237_v32 = vld [vmem:[#allocation7 + $0x60] sm:$0xff]  ;;  %v239_v33 = vld [vmem:[#allocation7 + $0x70] sm:$0xff] }
  0x3f   :  { %475 = vmatpush3.bf16.msra.mxu0 %v472_v6  ;;  %v491_v31 = vpack.c.bf16 %v240_v29, %v238_v28  ;;  %v493_v34 = vpack.c.bf16 %v239_v33, %v237_v32  ;;  %v150_v40 = vld [vmem:[%s716_s2] sm:$0x7]  ;;  %s628_s2 = smov [#allocation8]  }
  0x40   :  { %456 = vmatprep.subr.mxu0 %v65_v7  ;;  %s423_s29 = sshll.u32 %s628_s2, 4  ;;  %s424_s29 = int_to_ptr.vmem [resolvable:$true] %s423_s29 }
  0x41   :  { %s589_s30 = scalar_lea.vmem %s424_s29, 256  ;;  %p594_p11 = scmp.lt.s32.totalorder %s424_s29, %s424_s29 }
  0x42   :  { %p590_p10 = scmp.ne.s32.totalorder %s424_s29, %s589_s30  ;;  %p595_p12 = scmp.lt.s32.totalorder %s589_s30, %s589_s30 }
  0x43   :  { %457 = vmatpush3.msra.mxu0 %v65_v7 }
  0x44   :  { %459 = vmatmul.mubr.msk.f32.vlgmr.msra.gmra.mrb[0].mxu0 %vm66_vm0, %v60_v8  ;;  %496 = vmatprep.subr.bf16.mxu0 %v479_v14  ;;  %p596_p13 = por %p595_p12, %p594_p11 }
  0x45   :  { %405 = vmatprep.mubr.f32.mxu0 %v626_v10  ;;  %498 = vmatpush1.bf16.msra.mxu0 %v481_v18 }
  0x46   :  { %500 = vmatprep.subr.bf16.mxu0 %v483_v19  ;;  %p597_p0 = pnand %p596_p13, %p590_p10 }
  0x49   :  { %502 = vmatpush1.bf16.msra.mxu0 %v485_v24 }
  0x4a   :  { %504 = vmatprep.subr.bf16.mxu0 %v487_v25 }
  0x4d   :  { %506 = vmatpush1.bf16.msra.mxu0 %v489_v30 }
  0x4e   :  { %508 = vmatprep.subr.bf16.mxu0 %v491_v31 }
  0x51   :  { %510 = vmatpush1.bf16.msra.mxu0 %v493_v34 }
 0x117   :  { %v460_v35 = vpop.f32.mrb[0].mxu0 }
 0x118   :  { %v149_v36 = vmax.f32 %v460_v35, 0.0  ;;  %v139_v37 = vpop.f32.mrb[1].mxu0 }
 0x119   :  { %v148_v38 = vmax.f32 %v139_v37, 0.0 }
 0x11b   :  { %v477_v39 = vpack.c.bf16 %v149_v36, %v148_v38 }
 0x11d   :  { %478 = vmatpush3.bf16.msra.mxu1 %v477_v39 }
 0x11e   :  { %480 = vmatprep.subr.bf16.mxu1 %v479_v14 }
 0x120   :  { %466 = vmatmul.mubr.msk.f32.vlgmr.msra.gmra.mrb[0].mxu1 %vm151_vm2, %v150_v40 }
 0x121   :  { %482 = vmatpush1.bf16.msra.mxu1 %v481_v18  ;;  %309 = vmatprep.mubr.f32.mxu1 %v626_v10 }
 0x122   :  { %484 = vmatprep.subr.bf16.mxu1 %v483_v19 }
 0x125   :  { %486 = vmatpush1.bf16.msra.mxu1 %v485_v24 }
 0x126   :  { %488 = vmatprep.subr.bf16.mxu1 %v487_v25 }
 0x129   :  { %490 = vmatpush1.bf16.msra.mxu1 %v489_v30 }
 0x12a   :  { %492 = vmatprep.subr.bf16.mxu1 %v491_v31 }
 0x12d   :  { %494 = vmatpush1.bf16.msra.mxu1 %v493_v34 }
 0x1f3   :  { %v221_v41 = vpop.f32.mrb[0].mxu1 }
 0x1f4   :  { %v467_v42 = vpop.f32.mrb[1].mxu1  ;;  %436 = vmatmul.mubr.msk.f32.vlgmr.msra.gmra.mrb[2].mxu1 %vm241_vm3, %v221_v41  ;;  %337 = vrot.lane.b32.xlu0 %v221_v41, %s627_s28 }
 0x266   :  { %v338_v43 = vpop.permute.xlu0 %337 }
 0x267   :  { %437 = vmatmul.mubr.msk.f32.vlgmr.msra.gmra.mrb[2].mxu0 %vm241_vm3, %v338_v43 }
 0x2c7   :  { %v311_v44 = vpop.f32.mrb[2].mxu1 }
 0x2c8   :  { %v313_v45 = vpop.f32.mrb[3].mxu1 }
 0x2c9   :  { %v318_v46 = vcombine.low %v311_v44, %v313_v45 }
 0x2cb   :  { %320 = vst [vmem:[#allocation8] sm:$0x77] %v318_v46 }
 0x33a   :  { %v407_v47 = vpop.f32.mrb[2].mxu0 }
 0x33b   :  { %v409_v48 = vpop.f32.mrb[3].mxu0 }
 0x33c   :  { %v414_v49 = vcombine.low %v407_v47, %v409_v48 }
 0x33e   :  { %416 = vst [vmem:[#allocation8 + $0x8] sm:$0x77] %v414_v49 }
 0x33f   :  { %600 = shalt.err (!%p597_p0)
}
 0x340   :  { %s601_s7 = scalar_lea.hbm %s718_s4, 256 }
 0x341   :  { %p602_p1 = scmp.ne.s32.totalorder %s718_s4, %s601_s7  ;;  %p605_p2 = scmp.lt.u32.totalorder %s601_s7, %s718_s4 }
 0x343   :  { %p607_p3 = pnand %p605_p2, %p602_p1 }
 0x345   :  { %610 = shalt.err (!%p607_p3)
}
 0x346   :  { %426 = dma.vmem_to_hbm [thread:$0]  %s424_s29, 256, %s718_s4, [#allocation4]  }
 0x347   :  { %615 = dma.done.wait [#allocation4], 256  }
 0x348   :  { %616 = vsyncadd [#allocation4], 4294967040 }
 0x349   :  { %430 = vsyncpa [#allocation3], 1 }
 0x34a   :  { %431 = vsyncpa [#allocation6], 1 }
 0x34b   :  { %432 = vsyncpa [#allocation4], 1 }

</bundles_post_ra>
